<compile_context>
chip_gen: v5e
topology: v5e:2x2
jax: 0.10.0
libtpu: 0.0.40
codegen_flags: <defaults>
</compile_context>

<pallas_src>
import jax
import jax.numpy as jnp
from jax.experimental import pallas as pl
from jax.experimental.pallas import tpu as pltpu


def _round_up(x, m):
    return (x + m - 1) // m * m


def _pick_batch_tiling(B):
    """Returns (tile_b, padded_B). Single full-array tile for small B; for large B an
    aligned multi-tile grid with >= 2 iterations (keeps both v7x TensorCores busy)."""
    Bp8 = _round_up(B, 8)
    if Bp8 <= 512:
        return Bp8, Bp8                       # one tile == full array (always legal)
    tile_b = 512
    for t in (1024, 512, 256, 128):           # prefer exact divisors -> no padded z copy
        if Bp8 % t == 0 and Bp8 // t >= 2:
            tile_b = t
            break
    return tile_b, _round_up(Bp8, tile_b)


def _make_discriminator_kernel(tile_b, hidden_pad, drop_threshold_u32, apply_dropout,
                               use_hw_prng):
    def kernel(seed_ref, z_ref, w1_ref, b1_ref, w2_ref, b2_ref, out_ref):
        # linear_in: [TILE_B, L](bf16) @ [L, Hp](bf16) -> f32 accumulate on the MXU
        h = jnp.dot(z_ref[...], w1_ref[...], preferred_element_type=jnp.float32)
        h = jnp.maximum(h + b1_ref[...], 0.0)                    # bias + ReLU (f32, VPU)

        if apply_dropout:
            if use_hw_prng:
                # Hardware PRNG: reseed per batch tile so masks differ across tiles.
                pltpu.prng_seed(seed_ref[0] + pl.program_id(0))
                bits = pltpu.prng_random_bits((tile_b, hidden_pad)).astype(jnp.uint32)
            else:
                # Fallback (interpret / non-TPU): counter-based murmur3-finalizer hash.
                rows = jax.lax.broadcasted_iota(jnp.uint32, (tile_b, hidden_pad), 0)
                cols = jax.lax.broadcasted_iota(jnp.uint32, (tile_b, hidden_pad), 1)
                base = (seed_ref[0]
                        + pl.program_id(0) * (tile_b * hidden_pad)).astype(jnp.uint32)
                x = (base + rows * jnp.uint32(hidden_pad) + cols) * jnp.uint32(0x9E3779B1)
                x = x ^ (x >> 16)
                x = x * jnp.uint32(0x85EBCA6B)
                x = x ^ (x >> 13)
                x = x * jnp.uint32(0xC2B2AE35)
                bits = x ^ (x >> 16)
            # P(drop) = drop_threshold / 2^32; 1/(1-p) scale is folded into w2 outside.
            keep = bits >= jnp.uint32(drop_threshold_u32)
            h = jnp.where(keep, h, 0.0)

        # linear_out: [TILE_B, Hp](bf16) @ [Hp, O](bf16) -> f32; O is the real (narrow)
        # output width, so the final store writes only the useful bytes.
        logits = jnp.dot(h.astype(jnp.bfloat16), w2_ref[...],
                         preferred_element_type=jnp.float32)
        logits = logits + b2_ref[...]
        # sigmoid: exp + approx reciprocal both run on the EUP slot.
        out_ref[...] = pl.reciprocal(1.0 + jnp.exp(-logits), approx=True)

    return kernel


def discriminator_forward(z, w1, b1, w2, b2, seed, dropout_ratio=0.1, train=True):
    """z: [B, L], w1: [L, H], b1: [H], w2: [H, O], b2: [O]  (weights stored [in, out]).

    NOTE: the dropout mask is a deterministic function of `seed` (and the grid index);
    callers should derive `seed` from the training-step counter to vary masks per step.
    """
    f32, bf16 = jnp.float32, jnp.bfloat16
    B, L = z.shape
    H = w1.shape[1]
    O = w2.shape[1]

    p = float(dropout_ratio)
    assert 0.0 <= p < 1.0
    apply_dropout = bool(train) and p > 0.0
    scale = 1.0 / (1.0 - p) if apply_dropout else 1.0
    drop_threshold_u32 = min(int(round(p * float(1 << 32))), (1 << 32) - 1)

    # Hidden dim padded to a lane-dense multiple of 128; zero padding is exact
    # (padded hidden cols stay 0 through ReLU/dropout and padded w2 rows are 0).
    Hp = _round_up(H, 128)
    w1p = jnp.zeros((L, Hp), f32).at[:, :H].set(w1.astype(f32)).astype(bf16)
    b1p = jnp.zeros((1, Hp), f32).at[:, :H].set(b1.astype(f32).reshape(1, H))
    w2p = jnp.zeros((Hp, O), f32).at[:H, :].set(w2.astype(f32) * scale).astype(bf16)
    b2p = b2.astype(f32).reshape(1, O)

    tile_b, Bp = _pick_batch_tiling(B)
    zp = z.astype(bf16)
    if Bp != B:
        # TODO(synk): for very large ragged B, mask the tail tile in-kernel instead of
        # materializing a padded copy of z in HBM.
        zp = jnp.zeros((Bp, L), bf16).at[:B].set(zp)
    grid = (Bp // tile_b,)

    seed_arr = jnp.asarray([int(seed) & 0x7FFFFFFF], dtype=jnp.int32)
    use_hw_prng = jax.default_backend() == "tpu"

    kernel = _make_discriminator_kernel(tile_b, Hp, drop_threshold_u32, apply_dropout,
                                        use_hw_prng)

    out = pl.pallas_call(
        kernel,
        out_shape=jax.ShapeDtypeStruct((Bp, O), f32),
        grid=grid,
        in_specs=[
            pl.BlockSpec(memory_space=pltpu.SMEM),          # seed (scalar)
            pl.BlockSpec((tile_b, L), lambda i: (i, 0)),    # z: tiled over batch (bf16)
            pl.BlockSpec((L, Hp), lambda i: (0, 0)),        # w1: resident (bf16)
            pl.BlockSpec((1, Hp), lambda i: (0, 0)),        # b1: resident (f32)
            pl.BlockSpec((Hp, O), lambda i: (0, 0)),        # w2 (pre-scaled): resident (bf16)
            pl.BlockSpec((1, O), lambda i: (0, 0)),         # b2: resident (f32)
        ],
        out_specs=pl.BlockSpec((tile_b, O), lambda i: (i, 0)),   # narrow, un-padded output
        compiler_params=pltpu.CompilerParams(dimension_semantics=("parallel",)),
    )(seed_arr, zp, w1p, b1p, w2p, b2p)

    return out[:B]


def init_discriminator_params(key, latent_dim, hidden_dim, out_dim):
    """Deterministic init mimicking torch.nn.Linear (uniform +/- 1/sqrt(fan_in))."""
    k1, k2, k3, k4 = jax.random.split(key, 4)
    bound1 = 1.0 / (latent_dim ** 0.5)
    bound2 = 1.0 / (hidden_dim ** 0.5)
    # stored as [in, out] so the kernel computes z @ W (torch stores [out, in])
    w1 = jax.random.uniform(k1, (latent_dim, hidden_dim), jnp.float32, -bound1, bound1)
    b1 = jax.random.uniform(k2, (hidden_dim,), jnp.float32, -bound1, bound1)
    w2 = jax.random.uniform(k3, (hidden_dim, out_dim), jnp.float32, -bound2, bound2)
    b2 = jax.random.uniform(k4, (out_dim,), jnp.float32, -bound2, bound2)
    return w1, b1, w2, b2


if __name__ == "__main__":
    latent_dim, hidden_dim, out_dim = 32, 64, 8
    batch = 8
    dropout_ratio = 0.1

    key = jax.random.PRNGKey(0)
    kz, kp = jax.random.split(key)
    z = jax.random.normal(kz, (batch, latent_dim), jnp.float32)
    w1, b1, w2, b2 = init_discriminator_params(kp, latent_dim, hidden_dim, out_dim)

    # Training-mode forward (dropout active).
    probs = discriminator_forward(z, w1, b1, w2, b2, seed=1234,
                                  dropout_ratio=dropout_ratio, train=True)
    probs = jax.block_until_ready(probs)
    assert probs.shape == (batch, out_dim)
    assert bool(jnp.all((probs >= 0.0) & (probs <= 1.0)))

    # Eval-mode forward (no dropout) checked against a pure-JAX f32 reference
    # (loose tolerance: matmuls run in bf16 on the MXU).
    probs_eval = discriminator_forward(z, w1, b1, w2, b2, seed=0,
                                       dropout_ratio=dropout_ratio, train=False)
    probs_eval = jax.block_until_ready(probs_eval)
    ref = jax.nn.sigmoid(jnp.maximum(z @ w1 + b1, 0.0) @ w2 + b2)
    assert bool(jnp.all(jnp.abs(probs_eval - ref) < 3e-2))

    print("KERNEL_OK")
</pallas_src>

<mosaic_0001>
module attributes {stable_mosaic.version = 11 : i64} {
  func.func @kernel(%arg0: i32, %arg1: memref<1xi32, #tpu.memory_space<smem>>, %arg2: memref<8x32xbf16, #tpu.memory_space<vmem>>, %arg3: memref<32x128xbf16, #tpu.memory_space<vmem>>, %arg4: memref<1x128xf32, #tpu.memory_space<vmem>>, %arg5: memref<128x8xbf16, #tpu.memory_space<vmem>>, %arg6: memref<1x8xf32, #tpu.memory_space<vmem>>, %arg7: memref<8x8xf32, #tpu.memory_space<vmem>>) attributes {dimension_semantics = [#tpu.dimension_semantics<parallel>], iteration_bounds = array<i64: 1>, scalar_prefetch = 0 : i64, scratch_operands = 0 : i64, tpu.core_type = #tpu.core_type<tc>, window_params = [{transform_indices = @transform_0, window_bounds = array<i64: 1>}, {transform_indices = @transform_1, window_bounds = array<i64: 8, 32>}, {pipeline_mode = #tpu.pipeline_mode<synchronous>, transform_indices = @transform_2, window_bounds = array<i64: 32, 128>}, {pipeline_mode = #tpu.pipeline_mode<synchronous>, transform_indices = @transform_3, window_bounds = array<i64: 1, 128>}, {pipeline_mode = #tpu.pipeline_mode<synchronous>, transform_indices = @transform_4, window_bounds = array<i64: 128, 8>}, {pipeline_mode = #tpu.pipeline_mode<synchronous>, transform_indices = @transform_5, window_bounds = array<i64: 1, 8>}, {transform_indices = @transform_6, window_bounds = array<i64: 8, 8>}]} {
    %c0 = arith.constant 0 : index
    %c0_0 = arith.constant 0 : index
    %0 = vector.load %arg2[%c0, %c0_0] : memref<8x32xbf16, #tpu.memory_space<vmem>>, vector<8x32xbf16>
    %c0_1 = arith.constant 0 : index
    %c0_2 = arith.constant 0 : index
    %1 = vector.load %arg3[%c0_1, %c0_2] : memref<32x128xbf16, #tpu.memory_space<vmem>>, vector<32x128xbf16>
    %cst = arith.constant dense<0.000000e+00> : vector<8x128xf32>
    %2 = tpu.matmul %0, %1, %cst {dimension_numbers = #tpu.dot_dimension_numbers<[1], [0], [0], [1], [0, 0, 1, 1], [], []>} : vector<8x32xbf16>, vector<32x128xbf16>, vector<8x128xf32> -> vector<8x128xf32>
    %c0_3 = arith.constant 0 : index
    %c0_4 = arith.constant 0 : index
    %3 = vector.load %arg4[%c0_3, %c0_4] : memref<1x128xf32, #tpu.memory_space<vmem>>, vector<1x128xf32>
    %4 = vector.broadcast %3 : vector<1x128xf32> to vector<8x128xf32>
    %5 = arith.addf %2, %4 : vector<8x128xf32>
    %cst_5 = arith.constant 0.000000e+00 : f32
    %6 = vector.broadcast %cst_5 : f32 to vector<8x128xf32>
    %7 = arith.maximumf %5, %6 : vector<8x128xf32>
    %8 = tpu.iota {dimensions = array<i32: 0>} : vector<8x128xi32>
    %9 = tpu.iota {dimensions = array<i32: 1>} : vector<8x128xi32>
    %c0_6 = arith.constant 0 : index
    %10 = memref.load %arg1[%c0_6] : memref<1xi32, #tpu.memory_space<smem>>
    %c1024_i32 = arith.constant 1024 : i32
    %11 = arith.muli %arg0, %c1024_i32 : i32
    %12 = arith.addi %10, %11 : i32
    %c128_i32 = arith.constant 128 : i32
    %13 = vector.broadcast %c128_i32 : i32 to vector<8x128xi32>
    %14 = arith.muli %8, %13 : vector<8x128xi32>
    %15 = vector.broadcast %12 : i32 to vector<8x128xi32>
    %16 = arith.addi %15, %14 : vector<8x128xi32>
    %17 = arith.addi %16, %9 : vector<8x128xi32>
    %c-1640531535_i32 = arith.constant -1640531535 : i32
    %18 = vector.broadcast %c-1640531535_i32 : i32 to vector<8x128xi32>
    %19 = arith.muli %17, %18 : vector<8x128xi32>
    %c16_i32 = arith.constant 16 : i32
    %20 = vector.broadcast %c16_i32 : i32 to vector<8x128xi32>
    %21 = arith.shrui %19, %20 : vector<8x128xi32>
    %22 = arith.xori %19, %21 : vector<8x128xi32>
    %c-2048144789_i32 = arith.constant -2048144789 : i32
    %23 = vector.broadcast %c-2048144789_i32 : i32 to vector<8x128xi32>
    %24 = arith.muli %22, %23 : vector<8x128xi32>
    %c13_i32 = arith.constant 13 : i32
    %25 = vector.broadcast %c13_i32 : i32 to vector<8x128xi32>
    %26 = arith.shrui %24, %25 : vector<8x128xi32>
    %27 = arith.xori %24, %26 : vector<8x128xi32>
    %c-1028477387_i32 = arith.constant -1028477387 : i32
    %28 = vector.broadcast %c-1028477387_i32 : i32 to vector<8x128xi32>
    %29 = arith.muli %27, %28 : vector<8x128xi32>
    %c16_i32_7 = arith.constant 16 : i32
    %30 = vector.broadcast %c16_i32_7 : i32 to vector<8x128xi32>
    %31 = arith.shrui %29, %30 : vector<8x128xi32>
    %32 = arith.xori %29, %31 : vector<8x128xi32>
    %c429496730_i32 = arith.constant 429496730 : i32
    %33 = vector.broadcast %c429496730_i32 : i32 to vector<8x128xi32>
    %34 = arith.cmpi uge, %32, %33 : vector<8x128xi32>
    %cst_8 = arith.constant 0.000000e+00 : f32
    %35 = vector.broadcast %cst_8 : f32 to vector<8x128xf32>
    %36 = arith.select %34, %7, %35 : vector<8x128xi1>, vector<8x128xf32>
    %37 = arith.truncf %36 : vector<8x128xf32> to vector<8x128xbf16>
    %c0_9 = arith.constant 0 : index
    %c0_10 = arith.constant 0 : index
    %38 = vector.load %arg5[%c0_9, %c0_10] : memref<128x8xbf16, #tpu.memory_space<vmem>>, vector<128x8xbf16>
    %cst_11 = arith.constant dense<0.000000e+00> : vector<8x8xf32>
    %39 = tpu.matmul %37, %38, %cst_11 {dimension_numbers = #tpu.dot_dimension_numbers<[1], [0], [0], [1], [0, 0, 1, 1], [], []>} : vector<8x128xbf16>, vector<128x8xbf16>, vector<8x8xf32> -> vector<8x8xf32>
    %c0_12 = arith.constant 0 : index
    %c0_13 = arith.constant 0 : index
    %40 = vector.load %arg6[%c0_12, %c0_13] : memref<1x8xf32, #tpu.memory_space<vmem>>, vector<1x8xf32>
    %41 = vector.broadcast %40 : vector<1x8xf32> to vector<8x8xf32>
    %42 = arith.addf %39, %41 : vector<8x8xf32>
    %cst_14 = arith.constant 0.000000e+00 : f32
    %43 = vector.broadcast %cst_14 : f32 to vector<8x8xf32>
    %44 = arith.subf %43, %42 : vector<8x8xf32>
    %45 = math.exp %44 : vector<8x8xf32>
    %cst_15 = arith.constant 1.000000e+00 : f32
    %46 = vector.broadcast %cst_15 : f32 to vector<8x8xf32>
    %47 = arith.addf %46, %45 : vector<8x8xf32>
    %48 = tpu.reciprocal %47 {approx = true} : vector<8x8xf32> -> vector<8x8xf32>
    %c0_16 = arith.constant 0 : index
    %c0_17 = arith.constant 0 : index
    %49 = vector.load %arg7[%c0_16, %c0_17] : memref<8x8xf32, #tpu.memory_space<vmem>>, vector<8x8xf32>
    tpu.vector_store %arg7[%c0_16, %c0_17], %48 {strides = array<i32>} : memref<8x8xf32, #tpu.memory_space<vmem>>, vector<8x8xf32>,
    return
  }
  func.func @transform_0(%arg0: i32) -> i32 {
    %c0_i32 = arith.constant 0 : i32
    %c0_i32_0 = arith.constant 0 : i32
    return %c0_i32 : i32
  }
  func.func @transform_1(%arg0: i32) -> (i32, i32) {
    %c0_i32 = arith.constant 0 : i32
    %c0_i32_0 = arith.constant 0 : i32
    return %arg0, %c0_i32 : i32, i32
  }
  func.func @transform_2(%arg0: i32) -> (i32, i32) {
    %c0_i32 = arith.constant 0 : i32
    %c0_i32_0 = arith.constant 0 : i32
    %c0_i32_1 = arith.constant 0 : i32
    return %c0_i32, %c0_i32_0 : i32, i32
  }
  func.func @transform_3(%arg0: i32) -> (i32, i32) {
    %c0_i32 = arith.constant 0 : i32
    %c0_i32_0 = arith.constant 0 : i32
    %c0_i32_1 = arith.constant 0 : i32
    return %c0_i32, %c0_i32_0 : i32, i32
  }
  func.func @transform_4(%arg0: i32) -> (i32, i32) {
    %c0_i32 = arith.constant 0 : i32
    %c0_i32_0 = arith.constant 0 : i32
    %c0_i32_1 = arith.constant 0 : i32
    return %c0_i32, %c0_i32_0 : i32, i32
  }
  func.func @transform_5(%arg0: i32) -> (i32, i32) {
    %c0_i32 = arith.constant 0 : i32
    %c0_i32_0 = arith.constant 0 : i32
    %c0_i32_1 = arith.constant 0 : i32
    return %c0_i32, %c0_i32_0 : i32, i32
  }
  func.func @transform_6(%arg0: i32) -> (i32, i32) {
    %c0_i32 = arith.constant 0 : i32
    %c0_i32_0 = arith.constant 0 : i32
    return %arg0, %c0_i32 : i32, i32
  }
}

</mosaic_0001>

<bundles_post_ra>
// kernel: tpu_custom_call.1
= control target key start
LH: loop header
LB: loop body
LE: loop exit
PB: predicated region body
PF: predicated region fallthrough
CT: control target
= control target key end

     0   :  { %s363_s0 = inlined_call_operand.<no memory space> [shape: s32[1], index: 0, kind: input, shape index: {}]   ;;  %s364_s1 = inlined_call_operand.vmem [shape: bf16[8,32], index: 1, kind: input, shape index: {}]   ;;  %s365_s2 = inlined_call_operand.vmem [shape: bf16[32,128], index: 2, kind: input, shape index: {}]   ;;  %s366_s3 = inlined_call_operand.vmem [shape: f32[1,128], index: 3, kind: input, shape index: {}]   ;;  %s367_s4 = inlined_call_operand.vmem [shape: bf16[128,8], index: 4, kind: input, shape index: {}]   ;;  %s368_s5 = inlined_call_operand.vmem [shape: f32[1,8], index: 5, kind: input, shape index: {}]   ;;  %s369_s6 = inlined_call_operand.hbm [shape: f32[8,8], index: 6, kind: output, shape index: {}]  }
   0x1   :  { %v240_v0 = vld [vmem:[%s365_s2 + $0x8] sm:$0xff]  ;;  %v248_v1 = vld [vmem:[%s367_s4 + $0x38] sm:$0xff]  ;;  %v239_v2 = vld [vmem:[%s365_s2] sm:$0xff] }
   0x2   :  { %57 = vmatpush.bf16.msra.mxu0 %v240_v0  ;;  %158 = vmatpush.bf16.msra.mxu1 %v248_v1  ;;  %v247_v3 = vld [vmem:[%s367_s4 + $0x30] sm:$0xff] }
   0x3   :  { %12 = vsyncpa [#allocation4], 0  ;;  %v26_v4 = vld [vmem:[%s364_s1] sm:$0xf]  ;;  %vm47_vm0 = vcmask 261120   ;;  %v246_v5 = vld [vmem:[%s367_s4 + $0x28] sm:$0xff]  ;;  %v65_v9 = vlaneseq  ;;  %v73_v12 = vstv %s363_s0 }
   0x4   :  { %v245_v6 = vld [vmem:[%s367_s4 + $0x20] sm:$0xff]  ;;  %v244_v7 = vld [vmem:[%s367_s4 + $0x18] sm:$0xff]  ;;  %v243_v8 = vld [vmem:[%s367_s4 + $0x10] sm:$0xff]  ;;  %s185_s24 = sshll.u32 %s369_s6, 4  ;;  %vm176_vm3 = vcmask 64512   ;;  %s186_s24 = int_to_ptr.hbm [resolvable:$true] %s185_s24 }
   0x5   :  { %v66_v10 = vshrl.u32 %v65_v9, 7  ;;  %v68_v13 = vand.u32 127, %v65_v9  ;;  %v242_v18 = vld [vmem:[%s367_s4 + $0x8] sm:$0xff]  ;;  %v241_v20 = vld [vmem:[%s367_s4] sm:$0xff] }
   0x6   :  { %58 = vmatpush.bf16.msra.mxu0 %v239_v2  ;;  %159 = vmatpush.bf16.msra.mxu1 %v247_v3  ;;  %v250_v27 = vld [vmem:[%s366_s3] ss:$0 sm:$0xff]  ;;  %s282_s3 = smov [#allocation3]  }
   0x7   :  { %v72_v11 = vmul.u32 128, %v66_v10  ;;  %v251_v34 = vld [vmem:[%s368_s5] ss:$0 sm:$0xff]  ;;  %s183_s21 = sshll.u32 %s282_s3, 4  ;;  %s184_s21 = int_to_ptr.vmem [resolvable:$true] %s183_s21 }
   0x9   :  { %202 = vmatmul.msk.bf16.vlgmr.msra.gmra.mxu0 %vm47_vm0, %v26_v4  ;;  %v74_v14 = vadd.s32 %v73_v12, %v72_v11 }
   0xa   :  { %160 = vmatpush.bf16.msra.mxu1 %v246_v5 }
   0xb   :  { %v75_v15 = vadd.s32 %v74_v14, %v68_v13 }
   0xd   :  { %v76_v16 = vmul.u32 2654435761, %v75_v15 }
   0xe   :  { %161 = vmatpush.bf16.msra.mxu1 %v245_v6 }
   0xf   :  { %v77_v17 = vshrl.u32 %v76_v16, 16 }
  0x11   :  { %v78_v19 = vxor.u32 %v77_v17, %v76_v16 }
  0x12   :  { %162 = vmatpush.bf16.msra.mxu1 %v244_v7 }
  0x13   :  { %v79_v21 = vmul.u32 2246822507, %v78_v19 }
  0x15   :  { %v80_v22 = vshrl.u32 %v79_v21, 13 }
  0x16   :  { %163 = vmatpush.bf16.msra.mxu1 %v243_v8 }
  0x17   :  { %v81_v23 = vxor.u32 %v80_v22, %v79_v21 }
  0x19   :  { %v82_v24 = vmul.u32 3266489909, %v81_v23 }
  0x1a   :  { %164 = vmatpush.bf16.msra.mxu1 %v242_v18 }
  0x1b   :  { %v83_v25 = vshrl.u32 %v82_v24, 16 }
  0x1d   :  { %v84_v26 = vxor.u32 %v83_v25, %v82_v24 }
  0x1e   :  { %165 = vmatpush.bf16.msra.mxu1 %v241_v20 }
  0x1f   :  { %v203_v28 = vxor.u32 2147483648, %v84_v26 }
  0x21   :  { %vm87_vm1 = vcmp.ge.s32.totalorder %v203_v28, 2576980378 }
  0x22   :  { %vm236_vm2 = vmpackc.low %vm87_vm1, %vm87_vm1 }
  0x86   :  { %v60_v29 = vpop.f32.mrf.mxu0 }
  0x87   :  { %v61_v30 = vadd.f32 %v250_v27, %v60_v29 }
  0x89   :  { %v64_v31 = vmax.f32 %v61_v30, 0.0 }
  0x8b   :  { %v237_v32 = vpack.c.bf16 %v64_v31, %v64_v31 }
  0x8d   :  { %238 = vmatmul.msk.bf16.vlgmr.msra.gmra.mxu1 %vm236_vm2, %v237_v32 }
  0x8e   :  { %v62_v33 = vpop.f32.mrf.mxu0 }
 0x10a   :  { %v167_v35 = vpop.f32.mrf.mxu1 }
 0x10b   :  { %v168_v36 = vadd.f32 %v251_v34, %v167_v35 }
 0x10d   :  { %v171_v37 = vsub.f32 0.0, %v168_v36 }
 0x10f   :  { %v172_v38 = vmul.f32 1.442695, %v171_v37 }
 0x111   :  { %252 = vpow2.f32 %v172_v38 }
 0x112   :  { %v169_v39 = vpop.f32.mrf.mxu1 }
 0x117   :  { %v253_v40 = vpop.eup %252 }
 0x118   :  { %v174_v41 = vadd.f32 1.0, %v253_v40 }
 0x11a   :  { %254 = vrcp.f32 %v174_v41 }
 0x120   :  { %v255_v42 = vpop.eup %254 }
 0x121   :  { %177 = vst.msk [vmem:[#allocation3] sm:$0xff] %vm176_vm3, %v255_v42 }
 0x122   :  { %188 = dma.vmem_to_hbm [thread:$0]  %s184_s21, 128, %s186_s24, [#allocation4]  }
 0x123   :  { %280 = dma.done.wait [#allocation4], 128  }
 0x124   :  { %281 = vsyncadd [#allocation4], 4294967168 }
 0x125   :  { %193 = vsyncpa [#allocation4], 1 }

</bundles_post_ra>
